<compile_context>
chip_gen: v6e
topology: v6e:2x2x1
jax: 0.10.0
libtpu: 0.0.40
codegen_flags: <defaults>
</compile_context>

<pallas_src>
import functools

import jax
import jax.numpy as jnp
from jax.experimental import pallas as pl
from jax.experimental.pallas import tpu as pltpu

HALO = 16   # >= 11 (largest conv half-width, kernel_size=23 -> pad 11)
K2 = 5      # branch-2 second conv kernel size (padding 2)
K3 = 23     # branch-3 second conv kernel size (padding 11)


def _round_up(x, m):
    return ((x + m - 1) // m) * m


def _inception_kernel(x_ref,            # (Cin, Lp)   channels-major, L-padded, per-batch resident
                      ws_ref, bs_ref,   # stacked 1x1: (Cs, Cin), (Cs, 1); rows = [h2p|h3p|p1|q4]
                      w2_ref, b2_ref,   # folded k=5 : (c21, K2*c20p), (c21, 1)
                      w3_ref, b3_ref,   # folded k=23: (c31, K3*c30p), (c31, 1)
                      out_ref,          # (Ctot, T)   rows = [p1|p2|p3|p4] (PyTorch order)
                      h_ref,            # scratch (c20p + c30p, W)   branch-2/3 intermediates
                      f2_ref, f3_ref,   # scratch (K2*c20p, T), (K3*c30p, T)  im2col operands
                      *, L_true, c1, c21, c31, c4, c20p, c30p):
    j = pl.program_id(1)
    T = out_ref.shape[1]                 # lane-dense L tile (multiple of 128)
    W = h_ref.shape[1]                   # T + 2*HALO
    cdt = h_ref.dtype
    odt = out_ref.dtype
    nh = c20p + c30p

    # Single dynamic, lane-aligned load of this tile's haloed x window.
    start = pl.multiple_of(j * T, 128)
    xw = x_ref[:, pl.ds(start, W)]                                   # (Cin, W)

    # ---- ONE stacked matmul for all four 1x1 convolutions --------------------
    #   rows [0 : nh)            branch-2 / branch-3 1x1 pre-activations (sublane-padded)
    #   rows [nh : nh+c1)        branch-1 1x1 pre-activation
    #   rows [nh+c1 : nh+c1+c4)  q4 = (W4/3) @ x + b4/3 ; the 3-tap sum below reproduces
    #                            AvgPool1d(3,1,1,count_include_pad) -> conv1x1 -> bias exactly
    #                            (x slab is zero-padded, so halo columns give b4/3 as required).
    stk = jnp.dot(ws_ref[...], xw, preferred_element_type=jnp.float32) + bs_ref[...]

    # ---- branch-2/3 intermediate activations (relu, conv zero-padding semantics) ----
    h_act = jnp.maximum(stk[0:nh, :], 0.0)
    boundary = jnp.logical_or(j == 0, j * T + T + HALO > L_true)

    @pl.when(boundary)
    def _():
        # Outside [0, L_true) the downstream conv must see ZERO padding, not relu(bias).
        pos = j * T - HALO + jax.lax.broadcasted_iota(jnp.int32, (1, W), 1)
        valid = jnp.logical_and(pos >= 0, pos < L_true)
        h_ref[...] = jnp.where(valid, h_act, 0.0).astype(cdt)

    @pl.when(jnp.logical_not(boundary))
    def _():
        h_ref[...] = h_act.astype(cdt)   # interior tiles: no iota/compare/select

    # ---- branch 1 : 1x1 conv + relu (store immediately, free the registers) ----
    p1 = jnp.maximum(stk[nh:nh + c1, HALO:HALO + T], 0.0)
    out_ref[0:c1, :] = p1.astype(odt)

    # ---- branch 4 : avgpool(3,1,1) -> 1x1 conv -> relu == 3-tap sum of q4 ----
    q4 = stk[nh + c1:nh + c1 + c4, :]
    p4 = jnp.maximum(q4[:, HALO - 1:HALO - 1 + T]
                     + q4[:, HALO:HALO + T]
                     + q4[:, HALO + 1:HALO + 1 + T], 0.0)
    out_ref[c1 + c21 + c31:c1 + c21 + c31 + c4, :] = p4.astype(odt)

    # ---- branch 2 : k=5 conv (pad 2), taps folded into the MXU contraction dim ----
    for t in range(K2):
        off = HALO - (K2 // 2) + t
        f2_ref[t * c20p:(t + 1) * c20p, :] = h_ref[0:c20p, off:off + T]
    p2 = jnp.maximum(
        jnp.dot(w2_ref[...], f2_ref[...], preferred_element_type=jnp.float32)
        + b2_ref[...], 0.0)
    out_ref[c1:c1 + c21, :] = p2.astype(odt)

    # ---- branch 3 : k=23 conv (pad 11) ----------------------------------------
    # TODO(synk): on v7x use MRB-accumulated per-tap matmuls reading h_ref at shifted
    # lane offsets and delete f3_ref entirely.
    for t in range(K3):
        off = HALO - (K3 // 2) + t
        f3_ref[t * c30p:(t + 1) * c30p, :] = h_ref[c20p:c20p + c30p, off:off + T]
    p3 = jnp.maximum(
        jnp.dot(w3_ref[...], f3_ref[...], preferred_element_type=jnp.float32)
        + b3_ref[...], 0.0)
    out_ref[c1 + c21:c1 + c21 + c31, :] = p3.astype(odt)


def inception_forward(x_ncl, params, *, l_tile=1024, use_bf16=False,
                      out_dtype=jnp.float32):
    """x_ncl: (B, Cin, L) float32 in PyTorch NCL layout. Returns (B, Ctot, L) out_dtype."""
    (w1, b1, w2a, b2a, w2b, b2b, w3a, b3a, w3b, b3b, w4, b4) = params
    B, Cin, L = x_ncl.shape
    c1 = w1.shape[1]
    c20, c21 = w2b.shape[1], w2b.shape[2]
    c30, c31 = w3b.shape[1], w3b.shape[2]
    c4 = w4.shape[1]
    Ctot = c1 + c21 + c31 + c4

    # bf16 operands (f32 accumulation) only pay off on v6e/v7x; keep f32 on v5e.
    cdt = jnp.bfloat16 if use_bf16 else jnp.float32
    sub = 16 if use_bf16 else 8              # sublane tile height for cdt
    c20p = _round_up(c20, sub)               # pad mid channels -> aligned im2col tap writes
    c30p = _round_up(c30, sub)

    # Lane-dense L tiling: T multiple of 128; L zero-padded to whole tiles.
    l_tile = _round_up(l_tile, 128)
    T = min(l_tile, _round_up(L, 128))
    L_pad = _round_up(L, T)
    Lp = L_pad + 2 * HALO
    W = T + 2 * HALO
    J = L_pad // T

    x_p = jnp.pad(x_ncl, ((0, 0), (0, 0), (HALO, HALO + L_pad - L))).astype(cdt)

    f32 = jnp.float32

    def pad_rows(a, rows):                   # pad Cout (first) axis with zero rows
        return jnp.pad(a, ((0, rows - a.shape[0]),) + ((0, 0),) * (a.ndim - 1))

    # ---- stacked 1x1 weight / bias: rows = [h2p | h3p | p1 | q4] -------------
    ws = jnp.concatenate([
        pad_rows(jnp.transpose(w2a), c20p),          # (c20p, Cin)
        pad_rows(jnp.transpose(w3a), c30p),          # (c30p, Cin)
        jnp.transpose(w1),                           # (c1,   Cin)
        jnp.transpose(w4) / 3.0,                     # (c4,   Cin)  /3 folded in
    ], axis=0).astype(cdt)
    bs = jnp.concatenate([
        pad_rows(jnp.transpose(b2a), c20p),
        pad_rows(jnp.transpose(b3a), c30p),
        jnp.transpose(b1),
        jnp.transpose(b4) / 3.0,                     # 3-tap sum restores b4 exactly
    ], axis=0).astype(f32)

    # ---- folded (im2col) weights, contraction dim padded to c*_p per tap -----
    def fold_w(w, cp):                               # (K, c, Cout) -> (Cout, K*cp)
        K = w.shape[0]
        wp = jnp.pad(w, ((0, 0), (0, cp - w.shape[1]), (0, 0)))
        return jnp.transpose(wp, (2, 0, 1)).reshape(w.shape[2], K * cp).astype(cdt)

    w2f = fold_w(w2b, c20p)
    b2f = jnp.transpose(b2b).astype(f32)
    w3f = fold_w(w3b, c30p)
    b3f = jnp.transpose(b3b).astype(f32)

    # VMEM budget estimate (double-buffered I/O + scratch) instead of a hard-coded limit.
    itm = jnp.dtype(cdt).itemsize
    vmem_est = (2 * Cin * Lp * itm
                + 2 * Ctot * T * jnp.dtype(out_dtype).itemsize
                + (c20p + c30p) * W * itm
                + (K2 * c20p + K3 * c30p) * T * itm
                + (ws.size + w2f.size + w3f.size) * itm
                + (1 << 20))
    vmem_limit = int(min(max(2 * vmem_est, 32 * 1024 * 1024), 64 * 1024 * 1024))

    full = lambda a: pl.BlockSpec(a.shape, lambda b, j: (0,) * a.ndim)
    kernel = functools.partial(_inception_kernel, L_true=L, c1=c1, c21=c21,
                               c31=c31, c4=c4, c20p=c20p, c30p=c30p)

    out = pl.pallas_call(
        kernel,
        out_shape=jax.ShapeDtypeStruct((B, Ctot, L_pad), out_dtype),
        grid_spec=pltpu.PrefetchScalarGridSpec(
            num_scalar_prefetch=0,
            grid=(B, J),
            in_specs=[
                # x slab resident per batch element (block index constant in j).
                pl.BlockSpec((None, Cin, Lp), lambda b, j: (b, 0, 0)),
                full(ws), full(bs), full(w2f), full(b2f), full(w3f), full(b3f),
            ],
            out_specs=pl.BlockSpec((None, Ctot, T), lambda b, j: (b, 0, j)),
            scratch_shapes=[
                pltpu.VMEM((c20p + c30p, W), cdt),   # branch-2/3 intermediates
                pltpu.VMEM((K2 * c20p, T), cdt),     # im2col operand, k=5
                pltpu.VMEM((K3 * c30p, T), cdt),     # im2col operand, k=23
            ],
        ),
        compiler_params=pltpu.CompilerParams(
            dimension_semantics=("parallel", "parallel"),
            vmem_limit_bytes=vmem_limit,
        ),
    )(x_p, ws, bs, w2f, b2f, w3f, b3f)

    return out[:, :, :L]


# ----------------------------------------------------------------------------
# Pure-JAX reference (lax.conv), used only for the correctness check.
# ----------------------------------------------------------------------------
def _ref_conv1d(x, w_kio, b, pad):
    w_oik = jnp.transpose(w_kio, (2, 1, 0))
    y = jax.lax.conv_general_dilated(
        x, w_oik, window_strides=(1,), padding=[(pad, pad)],
        dimension_numbers=("NCH", "OIH", "NCH"))
    return y + b.reshape(1, -1, 1)


def _ref_forward(x, params):
    (w1, b1, w2a, b2a, w2b, b2b, w3a, b3a, w3b, b3b, w4, b4) = params
    relu = jax.nn.relu
    p1 = relu(_ref_conv1d(x, w1[None], b1[0], 0))
    p2 = relu(_ref_conv1d(relu(_ref_conv1d(x, w2a[None], b2a[0], 0)), w2b, b2b[0], 2))
    p3 = relu(_ref_conv1d(relu(_ref_conv1d(x, w3a[None], b3a[0], 0)), w3b, b3b[0], 11))
    xp = jnp.pad(x, ((0, 0), (0, 0), (1, 1)))
    avg = (xp[:, :, :-2] + xp[:, :, 1:-1] + xp[:, :, 2:]) / 3.0   # count_include_pad=True
    p4 = relu(_ref_conv1d(avg, w4[None], b4[0], 0))
    return jnp.concatenate([p1, p2, p3, p4], axis=1)


def make_params(key, in_channels, c1, c2, c3, c4):
    ks = jax.random.split(key, 12)
    n = lambda k, shape: 0.1 * jax.random.normal(k, shape, jnp.float32)
    w1 = n(ks[0], (in_channels, c1));        b1 = n(ks[1], (1, c1))
    w2a = n(ks[2], (in_channels, c2[0]));    b2a = n(ks[3], (1, c2[0]))
    w2b = n(ks[4], (K2, c2[0], c2[1]));      b2b = n(ks[5], (1, c2[1]))
    w3a = n(ks[6], (in_channels, c3[0]));    b3a = n(ks[7], (1, c3[0]))
    w3b = n(ks[8], (K3, c3[0], c3[1]));      b3b = n(ks[9], (1, c3[1]))
    w4 = n(ks[10], (in_channels, c4));       b4 = n(ks[11], (1, c4))
    return (w1, b1, w2a, b2a, w2b, b2b, w3a, b3a, w3b, b3b, w4, b4)


if __name__ == "__main__":
    key = jax.random.PRNGKey(0)
    k_x, k_p, k_x2, k_x3 = jax.random.split(key, 4)

    B, Cin, L = 2, 4, 16
    c1, c2, c3, c4 = 4, (4, 8), (4, 8), 4

    x = jax.random.normal(k_x, (B, Cin, L), jnp.float32)
    params = make_params(k_p, Cin, c1, c2, c3, c4)
    ref = _ref_forward(x, params)

    # f32 path, single L-tile (boundary-masked path).
    out = jax.block_until_ready(inception_forward(x, params))
    assert out.shape == (B, c1 + c2[1] + c3[1] + c4, L), out.shape
    err = float(jnp.max(jnp.abs(out - ref)))
    assert jnp.allclose(out, ref, atol=1e-4, rtol=1e-4), err

    # f32 path, multiple L-tiles with ragged tail (halo handling + tail masking).
    L2 = 200
    x2 = jax.random.normal(k_x2, (B, Cin, L2), jnp.float32)
    ref2 = _ref_forward(x2, params)
    out2 = jax.block_until_ready(inception_forward(x2, params, l_tile=128))
    err2 = float(jnp.max(jnp.abs(out2 - ref2)))
    assert out2.shape == ref2.shape, out2.shape
    assert jnp.allclose(out2, ref2, atol=1e-4, rtol=1e-4), err2

    # f32 path, long enough to exercise interior (unmasked) tiles.
    L3 = 700
    x3 = jax.random.normal(k_x3, (B, Cin, L3), jnp.float32)
    ref3 = _ref_forward(x3, params)
    out3 = jax.block_until_ready(inception_forward(x3, params, l_tile=128))
    err3 = float(jnp.max(jnp.abs(out3 - ref3)))
    assert out3.shape == ref3.shape, out3.shape
    assert jnp.allclose(out3, ref3, atol=1e-4, rtol=1e-4), err3

    # bf16-operand MXU path (f32 accumulation); looser tolerance vs f32 reference.
    out_bf = jax.block_until_ready(inception_forward(x, params, use_bf16=True))
    err_bf = float(jnp.max(jnp.abs(out_bf - ref)))
    assert jnp.allclose(out_bf, ref, atol=0.1, rtol=0.1), err_bf

    print("KERNEL_OK")
</pallas_src>

<mosaic_0001>
module attributes {stable_mosaic.version = 11 : i64} {
  func.func @_inception_kernel(%arg0: i32, %arg1: i32, %arg2: memref<1x4x160xf32, #tpu.memory_space<vmem>>, %arg3: memref<24x4xf32, #tpu.memory_space<vmem>>, %arg4: memref<24x1xf32, #tpu.memory_space<vmem>>, %arg5: memref<8x40xf32, #tpu.memory_space<vmem>>, %arg6: memref<8x1xf32, #tpu.memory_space<vmem>>, %arg7: memref<8x184xf32, #tpu.memory_space<vmem>>, %arg8: memref<8x1xf32, #tpu.memory_space<vmem>>, %arg9: memref<1x24x128xf32, #tpu.memory_space<vmem>>, %arg10: memref<16x160xf32, #tpu.memory_space<vmem>>, %arg11: memref<40x128xf32, #tpu.memory_space<vmem>>, %arg12: memref<184x128xf32, #tpu.memory_space<vmem>>) attributes {dimension_semantics = [#tpu.dimension_semantics<parallel>, #tpu.dimension_semantics<parallel>], iteration_bounds = array<i64: 2, 1>, scalar_prefetch = 0 : i64, scratch_operands = 3 : i64, tpu.core_type = #tpu.core_type<tc>, window_params = [{transform_indices = @transform_0, window_bounds = array<i64: 1, 4, 160>}, {pipeline_mode = #tpu.pipeline_mode<synchronous>, transform_indices = @transform_1, window_bounds = array<i64: 24, 4>}, {pipeline_mode = #tpu.pipeline_mode<synchronous>, transform_indices = @transform_2, window_bounds = array<i64: 24, 1>}, {pipeline_mode = #tpu.pipeline_mode<synchronous>, transform_indices = @transform_3, window_bounds = array<i64: 8, 40>}, {pipeline_mode = #tpu.pipeline_mode<synchronous>, transform_indices = @transform_4, window_bounds = array<i64: 8, 1>}, {pipeline_mode = #tpu.pipeline_mode<synchronous>, transform_indices = @transform_5, window_bounds = array<i64: 8, 184>}, {pipeline_mode = #tpu.pipeline_mode<synchronous>, transform_indices = @transform_6, window_bounds = array<i64: 8, 1>}, {transform_indices = @transform_7, window_bounds = array<i64: 1, 24, 128>}]} {
    %c128_i32 = arith.constant 128 : i32
    %0 = arith.muli %arg1, %c128_i32 : i32
    %1 = tpu.assume_multiple %0, 128 : i32
    %c0 = arith.constant 0 : index
    %c0_0 = arith.constant 0 : index
    %2 = arith.index_cast %1 : i32 to index
    %3 = vector.load %arg2[%c0, %c0_0, %2] : memref<1x4x160xf32, #tpu.memory_space<vmem>>, vector<1x4x160xf32>
    %4 = vector.shape_cast %3 : vector<1x4x160xf32> to vector<4x160xf32>
    %c0_1 = arith.constant 0 : index
    %c0_2 = arith.constant 0 : index
    %5 = vector.load %arg3[%c0_1, %c0_2] : memref<24x4xf32, #tpu.memory_space<vmem>>, vector<24x4xf32>
    %cst = arith.constant dense<0.000000e+00> : vector<24x160xf32>
    %6 = tpu.matmul %5, %4, %cst {dimension_numbers = #tpu.dot_dimension_numbers<[1], [0], [0], [1], [0, 0, 1, 1], [], []>} : vector<24x4xf32>, vector<4x160xf32>, vector<24x160xf32> -> vector<24x160xf32>
    %c0_3 = arith.constant 0 : index
    %c0_4 = arith.constant 0 : index
    %7 = vector.load %arg4[%c0_3, %c0_4] : memref<24x1xf32, #tpu.memory_space<vmem>>, vector<24x1xf32>
    %8 = vector.broadcast %7 : vector<24x1xf32> to vector<24x160xf32>
    %9 = arith.addf %6, %8 : vector<24x160xf32>
    %10 = vector.extract_strided_slice %9 {offsets = [0, 0], sizes = [16, 160], strides = [1, 1]} : vector<24x160xf32> to vector<16x160xf32>
    %cst_5 = arith.constant 0.000000e+00 : f32
    %11 = vector.broadcast %cst_5 : f32 to vector<16x160xf32>
    %12 = arith.maximumf %10, %11 : vector<16x160xf32>
    %c0_i32 = arith.constant 0 : i32
    %13 = arith.cmpi eq, %arg1, %c0_i32 : i32
    %c128_i32_6 = arith.constant 128 : i32
    %14 = arith.muli %arg1, %c128_i32_6 : i32
    %c128_i32_7 = arith.constant 128 : i32
    %15 = arith.addi %14, %c128_i32_7 : i32
    %c16_i32 = arith.constant 16 : i32
    %16 = arith.addi %15, %c16_i32 : i32
    %c16_i32_8 = arith.constant 16 : i32
    %17 = arith.cmpi sgt, %16, %c16_i32_8 : i32
    %18 = arith.ori %13, %17 : i1
    %19 = arith.extui %18 : i1 to i32
    %c0_i32_9 = arith.constant 0 : i32
    %20 = arith.cmpi ne, %19, %c0_i32_9 : i32
    scf.if %20 {
      %c128_i32_110 = arith.constant 128 : i32
      %119 = arith.muli %arg1, %c128_i32_110 : i32
      %c16_i32_111 = arith.constant 16 : i32
      %120 = arith.subi %119, %c16_i32_111 : i32
      %121 = tpu.iota {dimensions = array<i32: 1>} : vector<1x160xi32>
      %122 = vector.broadcast %120 : i32 to vector<1x160xi32>
      %123 = arith.addi %122, %121 : vector<1x160xi32>
      %c0_i32_112 = arith.constant 0 : i32
      %124 = vector.broadcast %c0_i32_112 : i32 to vector<1x160xi32>
      %125 = arith.cmpi sge, %123, %124 : vector<1x160xi32>
      %c16_i32_113 = arith.constant 16 : i32
      %126 = vector.broadcast %c16_i32_113 : i32 to vector<1x160xi32>
      %127 = arith.cmpi slt, %123, %126 : vector<1x160xi32>
      %128 = arith.andi %125, %127 : vector<1x160xi1>
      %cst_114 = arith.constant 0.000000e+00 : f32
      %129 = vector.shape_cast %128 : vector<1x160xi1> to vector<1x160xi1>
      %130 = vector.broadcast %129 : vector<1x160xi1> to vector<16x160xi1>
      %131 = vector.broadcast %cst_114 : f32 to vector<16x160xf32>
      %132 = arith.select %130, %12, %131 : vector<16x160xi1>, vector<16x160xf32>
      %c0_115 = arith.constant 0 : index
      %c0_116 = arith.constant 0 : index
      %133 = vector.load %arg10[%c0_115, %c0_116] : memref<16x160xf32, #tpu.memory_space<vmem>>, vector<16x160xf32>
      tpu.vector_store %arg10[%c0_115, %c0_116], %132 {strides = array<i32>} : memref<16x160xf32, #tpu.memory_space<vmem>>, vector<16x160xf32>,
    } else {
    }
    %true = arith.constant true
    %21 = arith.xori %18, %true : i1
    %22 = arith.extui %21 : i1 to i32
    %c0_i32_10 = arith.constant 0 : i32
    %23 = arith.cmpi ne, %22, %c0_i32_10 : i32
    scf.if %23 {
      %c0_110 = arith.constant 0 : index
      %c0_111 = arith.constant 0 : index
      %119 = vector.load %arg10[%c0_110, %c0_111] : memref<16x160xf32, #tpu.memory_space<vmem>>, vector<16x160xf32>
      tpu.vector_store %arg10[%c0_110, %c0_111], %12 {strides = array<i32>} : memref<16x160xf32, #tpu.memory_space<vmem>>, vector<16x160xf32>,
    } else {
    }
    %24 = vector.extract_strided_slice %9 {offsets = [16, 16], sizes = [4, 128], strides = [1, 1]} : vector<24x160xf32> to vector<4x128xf32>
    %cst_11 = arith.constant 0.000000e+00 : f32
    %25 = vector.broadcast %cst_11 : f32 to vector<4x128xf32>
    %26 = arith.maximumf %24, %25 : vector<4x128xf32>
    %c0_12 = arith.constant 0 : index
    %c0_13 = arith.constant 0 : index
    %c0_14 = arith.constant 0 : index
    %27 = vector.load %arg9[%c0_12, %c0_13, %c0_14] : memref<1x24x128xf32, #tpu.memory_space<vmem>>, vector<1x4x128xf32>
    %28 = vector.shape_cast %27 : vector<1x4x128xf32> to vector<4x128xf32>
    %29 = vector.shape_cast %26 : vector<4x128xf32> to vector<1x4x128xf32>
    tpu.vector_store %arg9[%c0_12, %c0_13, %c0_14], %29 {strides = array<i32>} : memref<1x24x128xf32, #tpu.memory_space<vmem>>, vector<1x4x128xf32>,
    %30 = vector.extract_strided_slice %9 {offsets = [20, 0], sizes = [4, 160], strides = [1, 1]} : vector<24x160xf32> to vector<4x160xf32>
    %31 = vector.extract_strided_slice %30 {offsets = [0, 15], sizes = [4, 128], strides = [1, 1]} : vector<4x160xf32> to vector<4x128xf32>
    %32 = vector.extract_strided_slice %30 {offsets = [0, 16], sizes = [4, 128], strides = [1, 1]} : vector<4x160xf32> to vector<4x128xf32>
    %33 = arith.addf %31, %32 : vector<4x128xf32>
    %34 = vector.extract_strided_slice %30 {offsets = [0, 17], sizes = [4, 128], strides = [1, 1]} : vector<4x160xf32> to vector<4x128xf32>
    %35 = arith.addf %33, %34 : vector<4x128xf32>
    %cst_15 = arith.constant 0.000000e+00 : f32
    %36 = vector.broadcast %cst_15 : f32 to vector<4x128xf32>
    %37 = arith.maximumf %35, %36 : vector<4x128xf32>
    %c0_16 = arith.constant 0 : index
    %c20 = arith.constant 20 : index
    %c0_17 = arith.constant 0 : index
    %38 = vector.load %arg9[%c0_16, %c20, %c0_17] : memref<1x24x128xf32, #tpu.memory_space<vmem>>, vector<1x4x128xf32>
    %39 = vector.shape_cast %38 : vector<1x4x128xf32> to vector<4x128xf32>
    %40 = vector.shape_cast %37 : vector<4x128xf32> to vector<1x4x128xf32>
    tpu.vector_store %arg9[%c0_16, %c20, %c0_17], %40 {strides = array<i32>} : memref<1x24x128xf32, #tpu.memory_space<vmem>>, vector<1x4x128xf32>,
    %c0_18 = arith.constant 0 : index
    %c14 = arith.constant 14 : index
    %41 = vector.load %arg10[%c0_18, %c14] : memref<16x160xf32, #tpu.memory_space<vmem>>, vector<8x128xf32>
    %c0_19 = arith.constant 0 : index
    %c0_20 = arith.constant 0 : index
    %42 = vector.load %arg11[%c0_19, %c0_20] : memref<40x128xf32, #tpu.memory_space<vmem>>, vector<8x128xf32>
    tpu.vector_store %arg11[%c0_19, %c0_20], %41 {strides = array<i32>} : memref<40x128xf32, #tpu.memory_space<vmem>>, vector<8x128xf32>,
    %c0_21 = arith.constant 0 : index
    %c15 = arith.constant 15 : index
    %43 = vector.load %arg10[%c0_21, %c15] : memref<16x160xf32, #tpu.memory_space<vmem>>, vector<8x128xf32>
    %c8 = arith.constant 8 : index
    %c0_22 = arith.constant 0 : index
    %44 = vector.load %arg11[%c8, %c0_22] : memref<40x128xf32, #tpu.memory_space<vmem>>, vector<8x128xf32>
    tpu.vector_store %arg11[%c8, %c0_22], %43 {strides = array<i32>} : memref<40x128xf32, #tpu.memory_space<vmem>>, vector<8x128xf32>,
    %c0_23 = arith.constant 0 : index
    %c16 = arith.constant 16 : index
    %45 = vector.load %arg10[%c0_23, %c16] : memref<16x160xf32, #tpu.memory_space<vmem>>, vector<8x128xf32>
    %c16_24 = arith.constant 16 : index
    %c0_25 = arith.constant 0 : index
    %46 = vector.load %arg11[%c16_24, %c0_25] : memref<40x128xf32, #tpu.memory_space<vmem>>, vector<8x128xf32>
    tpu.vector_store %arg11[%c16_24, %c0_25], %45 {strides = array<i32>} : memref<40x128xf32, #tpu.memory_space<vmem>>, vector<8x128xf32>,
    %c0_26 = arith.constant 0 : index
    %c17 = arith.constant 17 : index
    %47 = vector.load %arg10[%c0_26, %c17] : memref<16x160xf32, #tpu.memory_space<vmem>>, vector<8x128xf32>
    %c24 = arith.constant 24 : index
    %c0_27 = arith.constant 0 : index
    %48 = vector.load %arg11[%c24, %c0_27] : memref<40x128xf32, #tpu.memory_space<vmem>>, vector<8x128xf32>
    tpu.vector_store %arg11[%c24, %c0_27], %47 {strides = array<i32>} : memref<40x128xf32, #tpu.memory_space<vmem>>, vector<8x128xf32>,
    %c0_28 = arith.constant 0 : index
    %c18 = arith.constant 18 : index
    %49 = vector.load %arg10[%c0_28, %c18] : memref<16x160xf32, #tpu.memory_space<vmem>>, vector<8x128xf32>
    %c32 = arith.constant 32 : index
    %c0_29 = arith.constant 0 : index
    %50 = vector.load %arg11[%c32, %c0_29] : memref<40x128xf32, #tpu.memory_space<vmem>>, vector<8x128xf32>
    tpu.vector_store %arg11[%c32, %c0_29], %49 {strides = array<i32>} : memref<40x128xf32, #tpu.memory_space<vmem>>, vector<8x128xf32>,
    %c0_30 = arith.constant 0 : index
    %c0_31 = arith.constant 0 : index
    %51 = vector.load %arg5[%c0_30, %c0_31] : memref<8x40xf32, #tpu.memory_space<vmem>>, vector<8x40xf32>
    %c0_32 = arith.constant 0 : index
    %c0_33 = arith.constant 0 : index
    %52 = vector.load %arg11[%c0_32, %c0_33] : memref<40x128xf32, #tpu.memory_space<vmem>>, vector<40x128xf32>
    %cst_34 = arith.constant dense<0.000000e+00> : vector<8x128xf32>
    %53 = tpu.matmul %51, %52, %cst_34 {dimension_numbers = #tpu.dot_dimension_numbers<[1], [0], [0], [1], [0, 0, 1, 1], [], []>} : vector<8x40xf32>, vector<40x128xf32>, vector<8x128xf32> -> vector<8x128xf32>
    %c0_35 = arith.constant 0 : index
    %c0_36 = arith.constant 0 : index
    %54 = vector.load %arg6[%c0_35, %c0_36] : memref<8x1xf32, #tpu.memory_space<vmem>>, vector<8x1xf32>
    %55 = vector.broadcast %54 : vector<8x1xf32> to vector<8x128xf32>
    %56 = arith.addf %53, %55 : vector<8x128xf32>
    %cst_37 = arith.constant 0.000000e+00 : f32
    %57 = vector.broadcast %cst_37 : f32 to vector<8x128xf32>
    %58 = arith.maximumf %56, %57 : vector<8x128xf32>
    %c0_38 = arith.constant 0 : index
    %c4 = arith.constant 4 : index
    %c0_39 = arith.constant 0 : index
    %59 = vector.load %arg9[%c0_38, %c4, %c0_39] : memref<1x24x128xf32, #tpu.memory_space<vmem>>, vector<1x8x128xf32>
    %60 = vector.shape_cast %59 : vector<1x8x128xf32> to vector<8x128xf32>
    %61 = vector.shape_cast %58 : vector<8x128xf32> to vector<1x8x128xf32>
    tpu.vector_store %arg9[%c0_38, %c4, %c0_39], %61 {strides = array<i32>} : memref<1x24x128xf32, #tpu.memory_space<vmem>>, vector<1x8x128xf32>,
    %c8_40 = arith.constant 8 : index
    %c5 = arith.constant 5 : index
    %62 = vector.load %arg10[%c8_40, %c5] : memref<16x160xf32, #tpu.memory_space<vmem>>, vector<8x128xf32>
    %c0_41 = arith.constant 0 : index
    %c0_42 = arith.constant 0 : index
    %63 = vector.load %arg12[%c0_41, %c0_42] : memref<184x128xf32, #tpu.memory_space<vmem>>, vector<8x128xf32>
    tpu.vector_store %arg12[%c0_41, %c0_42], %62 {strides = array<i32>} : memref<184x128xf32, #tpu.memory_space<vmem>>, vector<8x128xf32>,
    %c8_43 = arith.constant 8 : index
    %c6 = arith.constant 6 : index
    %64 = vector.load %arg10[%c8_43, %c6] : memref<16x160xf32, #tpu.memory_space<vmem>>, vector<8x128xf32>
    %c8_44 = arith.constant 8 : index
    %c0_45 = arith.constant 0 : index
    %65 = vector.load %arg12[%c8_44, %c0_45] : memref<184x128xf32, #tpu.memory_space<vmem>>, vector<8x128xf32>
    tpu.vector_store %arg12[%c8_44, %c0_45], %64 {strides = array<i32>} : memref<184x128xf32, #tpu.memory_space<vmem>>, vector<8x128xf32>,
    %c8_46 = arith.constant 8 : index
    %c7 = arith.constant 7 : index
    %66 = vector.load %arg10[%c8_46, %c7] : memref<16x160xf32, #tpu.memory_space<vmem>>, vector<8x128xf32>
    %c16_47 = arith.constant 16 : index
    %c0_48 = arith.constant 0 : index
    %67 = vector.load %arg12[%c16_47, %c0_48] : memref<184x128xf32, #tpu.memory_space<vmem>>, vector<8x128xf32>
    tpu.vector_store %arg12[%c16_47, %c0_48], %66 {strides = array<i32>} : memref<184x128xf32, #tpu.memory_space<vmem>>, vector<8x128xf32>,
    %c8_49 = arith.constant 8 : index
    %c8_50 = arith.constant 8 : index
    %68 = vector.load %arg10[%c8_49, %c8_50] : memref<16x160xf32, #tpu.memory_space<vmem>>, vector<8x128xf32>
    %c24_51 = arith.constant 24 : index
    %c0_52 = arith.constant 0 : index
    %69 = vector.load %arg12[%c24_51, %c0_52] : memref<184x128xf32, #tpu.memory_space<vmem>>, vector<8x128xf32>
    tpu.vector_store %arg12[%c24_51, %c0_52], %68 {strides = array<i32>} : memref<184x128xf32, #tpu.memory_space<vmem>>, vector<8x128xf32>,
    %c8_53 = arith.constant 8 : index
    %c9 = arith.constant 9 : index
    %70 = vector.load %arg10[%c8_53, %c9] : memref<16x160xf32, #tpu.memory_space<vmem>>, vector<8x128xf32>
    %c32_54 = arith.constant 32 : index
    %c0_55 = arith.constant 0 : index
    %71 = vector.load %arg12[%c32_54, %c0_55] : memref<184x128xf32, #tpu.memory_space<vmem>>, vector<8x128xf32>
    tpu.vector_store %arg12[%c32_54, %c0_55], %70 {strides = array<i32>} : memref<184x128xf32, #tpu.memory_space<vmem>>, vector<8x128xf32>,
    %c8_56 = arith.constant 8 : index
    %c10 = arith.constant 10 : index
    %72 = vector.load %arg10[%c8_56, %c10] : memref<16x160xf32, #tpu.memory_space<vmem>>, vector<8x128xf32>
    %c40 = arith.constant 40 : index
    %c0_57 = arith.constant 0 : index
    %73 = vector.load %arg12[%c40, %c0_57] : memref<184x128xf32, #tpu.memory_space<vmem>>, vector<8x128xf32>
    tpu.vector_store %arg12[%c40, %c0_57], %72 {strides = array<i32>} : memref<184x128xf32, #tpu.memory_space<vmem>>, vector<8x128xf32>,
    %c8_58 = arith.constant 8 : index
    %c11 = arith.constant 11 : index
    %74 = vector.load %arg10[%c8_58, %c11] : memref<16x160xf32, #tpu.memory_space<vmem>>, vector<8x128xf32>
    %c48 = arith.constant 48 : index
    %c0_59 = arith.constant 0 : index
    %75 = vector.load %arg12[%c48, %c0_59] : memref<184x128xf32, #tpu.memory_space<vmem>>, vector<8x128xf32>
    tpu.vector_store %arg12[%c48, %c0_59], %74 {strides = array<i32>} : memref<184x128xf32, #tpu.memory_space<vmem>>, vector<8x128xf32>,
    %c8_60 = arith.constant 8 : index
    %c12 = arith.constant 12 : index
    %76 = vector.load %arg10[%c8_60, %c12] : memref<16x160xf32, #tpu.memory_space<vmem>>, vector<8x128xf32>
    %c56 = arith.constant 56 : index
    %c0_61 = arith.constant 0 : index
    %77 = vector.load %arg12[%c56, %c0_61] : memref<184x128xf32, #tpu.memory_space<vmem>>, vector<8x128xf32>
    tpu.vector_store %arg12[%c56, %c0_61], %76 {strides = array<i32>} : memref<184x128xf32, #tpu.memory_space<vmem>>, vector<8x128xf32>,
    %c8_62 = arith.constant 8 : index
    %c13 = arith.constant 13 : index
    %78 = vector.load %arg10[%c8_62, %c13] : memref<16x160xf32, #tpu.memory_space<vmem>>, vector<8x128xf32>
    %c64 = arith.constant 64 : index
    %c0_63 = arith.constant 0 : index
    %79 = vector.load %arg12[%c64, %c0_63] : memref<184x128xf32, #tpu.memory_space<vmem>>, vector<8x128xf32>
    tpu.vector_store %arg12[%c64, %c0_63], %78 {strides = array<i32>} : memref<184x128xf32, #tpu.memory_space<vmem>>, vector<8x128xf32>,
    %c8_64 = arith.constant 8 : index
    %c14_65 = arith.constant 14 : index
    %80 = vector.load %arg10[%c8_64, %c14_65] : memref<16x160xf32, #tpu.memory_space<vmem>>, vector<8x128xf32>
    %c72 = arith.constant 72 : index
    %c0_66 = arith.constant 0 : index
    %81 = vector.load %arg12[%c72, %c0_66] : memref<184x128xf32, #tpu.memory_space<vmem>>, vector<8x128xf32>
    tpu.vector_store %arg12[%c72, %c0_66], %80 {strides = array<i32>} : memref<184x128xf32, #tpu.memory_space<vmem>>, vector<8x128xf32>,
    %c8_67 = arith.constant 8 : index
    %c15_68 = arith.constant 15 : index
    %82 = vector.load %arg10[%c8_67, %c15_68] : memref<16x160xf32, #tpu.memory_space<vmem>>, vector<8x128xf32>
    %c80 = arith.constant 80 : index
    %c0_69 = arith.constant 0 : index
    %83 = vector.load %arg12[%c80, %c0_69] : memref<184x128xf32, #tpu.memory_space<vmem>>, vector<8x128xf32>
    tpu.vector_store %arg12[%c80, %c0_69], %82 {strides = array<i32>} : memref<184x128xf32, #tpu.memory_space<vmem>>, vector<8x128xf32>,
    %c8_70 = arith.constant 8 : index
    %c16_71 = arith.constant 16 : index
    %84 = vector.load %arg10[%c8_70, %c16_71] : memref<16x160xf32, #tpu.memory_space<vmem>>, vector<8x128xf32>
    %c88 = arith.constant 88 : index
    %c0_72 = arith.constant 0 : index
    %85 = vector.load %arg12[%c88, %c0_72] : memref<184x128xf32, #tpu.memory_space<vmem>>, vector<8x128xf32>
    tpu.vector_store %arg12[%c88, %c0_72], %84 {strides = array<i32>} : memref<184x128xf32, #tpu.memory_space<vmem>>, vector<8x128xf32>,
    %c8_73 = arith.constant 8 : index
    %c17_74 = arith.constant 17 : index
    %86 = vector.load %arg10[%c8_73, %c17_74] : memref<16x160xf32, #tpu.memory_space<vmem>>, vector<8x128xf32>
    %c96 = arith.constant 96 : index
    %c0_75 = arith.constant 0 : index
    %87 = vector.load %arg12[%c96, %c0_75] : memref<184x128xf32, #tpu.memory_space<vmem>>, vector<8x128xf32>
    tpu.vector_store %arg12[%c96, %c0_75], %86 {strides = array<i32>} : memref<184x128xf32, #tpu.memory_space<vmem>>, vector<8x128xf32>,
    %c8_76 = arith.constant 8 : index
    %c18_77 = arith.constant 18 : index
    %88 = vector.load %arg10[%c8_76, %c18_77] : memref<16x160xf32, #tpu.memory_space<vmem>>, vector<8x128xf32>
    %c104 = arith.constant 104 : index
    %c0_78 = arith.constant 0 : index
    %89 = vector.load %arg12[%c104, %c0_78] : memref<184x128xf32, #tpu.memory_space<vmem>>, vector<8x128xf32>
    tpu.vector_store %arg12[%c104, %c0_78], %88 {strides = array<i32>} : memref<184x128xf32, #tpu.memory_space<vmem>>, vector<8x128xf32>,
    %c8_79 = arith.constant 8 : index
    %c19 = arith.constant 19 : index
    %90 = vector.load %arg10[%c8_79, %c19] : memref<16x160xf32, #tpu.memory_space<vmem>>, vector<8x128xf32>
    %c112 = arith.constant 112 : index
    %c0_80 = arith.constant 0 : index
    %91 = vector.load %arg12[%c112, %c0_80] : memref<184x128xf32, #tpu.memory_space<vmem>>, vector<8x128xf32>
    tpu.vector_store %arg12[%c112, %c0_80], %90 {strides = array<i32>} : memref<184x128xf32, #tpu.memory_space<vmem>>, vector<8x128xf32>,
    %c8_81 = arith.constant 8 : index
    %c20_82 = arith.constant 20 : index
    %92 = vector.load %arg10[%c8_81, %c20_82] : memref<16x160xf32, #tpu.memory_space<vmem>>, vector<8x128xf32>
    %c120 = arith.constant 120 : index
    %c0_83 = arith.constant 0 : index
    %93 = vector.load %arg12[%c120, %c0_83] : memref<184x128xf32, #tpu.memory_space<vmem>>, vector<8x128xf32>
    tpu.vector_store %arg12[%c120, %c0_83], %92 {strides = array<i32>} : memref<184x128xf32, #tpu.memory_space<vmem>>, vector<8x128xf32>,
    %c8_84 = arith.constant 8 : index
    %c21 = arith.constant 21 : index
    %94 = vector.load %arg10[%c8_84, %c21] : memref<16x160xf32, #tpu.memory_space<vmem>>, vector<8x128xf32>
    %c128 = arith.constant 128 : index
    %c0_85 = arith.constant 0 : index
    %95 = vector.load %arg12[%c128, %c0_85] : memref<184x128xf32, #tpu.memory_space<vmem>>, vector<8x128xf32>
    tpu.vector_store %arg12[%c128, %c0_85], %94 {strides = array<i32>} : memref<184x128xf32, #tpu.memory_space<vmem>>, vector<8x128xf32>,
    %c8_86 = arith.constant 8 : index
    %c22 = arith.constant 22 : index
    %96 = vector.load %arg10[%c8_86, %c22] : memref<16x160xf32, #tpu.memory_space<vmem>>, vector<8x128xf32>
    %c136 = arith.constant 136 : index
    %c0_87 = arith.constant 0 : index
    %97 = vector.load %arg12[%c136, %c0_87] : memref<184x128xf32, #tpu.memory_space<vmem>>, vector<8x128xf32>
    tpu.vector_store %arg12[%c136, %c0_87], %96 {strides = array<i32>} : memref<184x128xf32, #tpu.memory_space<vmem>>, vector<8x128xf32>,
    %c8_88 = arith.constant 8 : index
    %c23 = arith.constant 23 : index
    %98 = vector.load %arg10[%c8_88, %c23] : memref<16x160xf32, #tpu.memory_space<vmem>>, vector<8x128xf32>
    %c144 = arith.constant 144 : index
    %c0_89 = arith.constant 0 : index
    %99 = vector.load %arg12[%c144, %c0_89] : memref<184x128xf32, #tpu.memory_space<vmem>>, vector<8x128xf32>
    tpu.vector_store %arg12[%c144, %c0_89], %98 {strides = array<i32>} : memref<184x128xf32, #tpu.memory_space<vmem>>, vector<8x128xf32>,
    %c8_90 = arith.constant 8 : index
    %c24_91 = arith.constant 24 : index
    %100 = vector.load %arg10[%c8_90, %c24_91] : memref<16x160xf32, #tpu.memory_space<vmem>>, vector<8x128xf32>
    %c152 = arith.constant 152 : index
    %c0_92 = arith.constant 0 : index
    %101 = vector.load %arg12[%c152, %c0_92] : memref<184x128xf32, #tpu.memory_space<vmem>>, vector<8x128xf32>
    tpu.vector_store %arg12[%c152, %c0_92], %100 {strides = array<i32>} : memref<184x128xf32, #tpu.memory_space<vmem>>, vector<8x128xf32>,
    %c8_93 = arith.constant 8 : index
    %c25 = arith.constant 25 : index
    %102 = vector.load %arg10[%c8_93, %c25] : memref<16x160xf32, #tpu.memory_space<vmem>>, vector<8x128xf32>
    %c160 = arith.constant 160 : index
    %c0_94 = arith.constant 0 : index
    %103 = vector.load %arg12[%c160, %c0_94] : memref<184x128xf32, #tpu.memory_space<vmem>>, vector<8x128xf32>
    tpu.vector_store %arg12[%c160, %c0_94], %102 {strides = array<i32>} : memref<184x128xf32, #tpu.memory_space<vmem>>, vector<8x128xf32>,
    %c8_95 = arith.constant 8 : index
    %c26 = arith.constant 26 : index
    %104 = vector.load %arg10[%c8_95, %c26] : memref<16x160xf32, #tpu.memory_space<vmem>>, vector<8x128xf32>
    %c168 = arith.constant 168 : index
    %c0_96 = arith.constant 0 : index
    %105 = vector.load %arg12[%c168, %c0_96] : memref<184x128xf32, #tpu.memory_space<vmem>>, vector<8x128xf32>
    tpu.vector_store %arg12[%c168, %c0_96], %104 {strides = array<i32>} : memref<184x128xf32, #tpu.memory_space<vmem>>, vector<8x128xf32>,
    %c8_97 = arith.constant 8 : index
    %c27 = arith.constant 27 : index
    %106 = vector.load %arg10[%c8_97, %c27] : memref<16x160xf32, #tpu.memory_space<vmem>>, vector<8x128xf32>
    %c176 = arith.constant 176 : index
    %c0_98 = arith.constant 0 : index
    %107 = vector.load %arg12[%c176, %c0_98] : memref<184x128xf32, #tpu.memory_space<vmem>>, vector<8x128xf32>
    tpu.vector_store %arg12[%c176, %c0_98], %106 {strides = array<i32>} : memref<184x128xf32, #tpu.memory_space<vmem>>, vector<8x128xf32>,
    %c0_99 = arith.constant 0 : index
    %c0_100 = arith.constant 0 : index
    %108 = vector.load %arg7[%c0_99, %c0_100] : memref<8x184xf32, #tpu.memory_space<vmem>>, vector<8x184xf32>
    %c0_101 = arith.constant 0 : index
    %c0_102 = arith.constant 0 : index
    %109 = vector.load %arg12[%c0_101, %c0_102] : memref<184x128xf32, #tpu.memory_space<vmem>>, vector<184x128xf32>
    %cst_103 = arith.constant dense<0.000000e+00> : vector<8x128xf32>
    %110 = tpu.matmul %108, %109, %cst_103 {dimension_numbers = #tpu.dot_dimension_numbers<[1], [0], [0], [1], [0, 0, 1, 1], [], []>} : vector<8x184xf32>, vector<184x128xf32>, vector<8x128xf32> -> vector<8x128xf32>
    %c0_104 = arith.constant 0 : index
    %c0_105 = arith.constant 0 : index
    %111 = vector.load %arg8[%c0_104, %c0_105] : memref<8x1xf32, #tpu.memory_space<vmem>>, vector<8x1xf32>
    %112 = vector.broadcast %111 : vector<8x1xf32> to vector<8x128xf32>
    %113 = arith.addf %110, %112 : vector<8x128xf32>
    %cst_106 = arith.constant 0.000000e+00 : f32
    %114 = vector.broadcast %cst_106 : f32 to vector<8x128xf32>
    %115 = arith.maximumf %113, %114 : vector<8x128xf32>
    %c0_107 = arith.constant 0 : index
    %c12_108 = arith.constant 12 : index
    %c0_109 = arith.constant 0 : index
    %116 = vector.load %arg9[%c0_107, %c12_108, %c0_109] : memref<1x24x128xf32, #tpu.memory_space<vmem>>, vector<1x8x128xf32>
    %117 = vector.shape_cast %116 : vector<1x8x128xf32> to vector<8x128xf32>
    %118 = vector.shape_cast %115 : vector<8x128xf32> to vector<1x8x128xf32>
    tpu.vector_store %arg9[%c0_107, %c12_108, %c0_109], %118 {strides = array<i32>} : memref<1x24x128xf32, #tpu.memory_space<vmem>>, vector<1x8x128xf32>,
    return
  }
  func.func @transform_0(%arg0: i32, %arg1: i32) -> (i32, i32, i32) {
    %c0_i32 = arith.constant 0 : i32
    %c0_i32_0 = arith.constant 0 : i32
    %c0_i32_1 = arith.constant 0 : i32
    return %arg0, %c0_i32, %c0_i32_0 : i32, i32, i32
  }
  func.func @transform_1(%arg0: i32, %arg1: i32) -> (i32, i32) {
    %c0_i32 = arith.constant 0 : i32
    %c0_i32_0 = arith.constant 0 : i32
    %c0_i32_1 = arith.constant 0 : i32
    return %c0_i32, %c0_i32_0 : i32, i32
  }
  func.func @transform_2(%arg0: i32, %arg1: i32) -> (i32, i32) {
    %c0_i32 = arith.constant 0 : i32
    %c0_i32_0 = arith.constant 0 : i32
    %c0_i32_1 = arith.constant 0 : i32
    return %c0_i32, %c0_i32_0 : i32, i32
  }
  func.func @transform_3(%arg0: i32, %arg1: i32) -> (i32, i32) {
    %c0_i32 = arith.constant 0 : i32
    %c0_i32_0 = arith.constant 0 : i32
    %c0_i32_1 = arith.constant 0 : i32
    return %c0_i32, %c0_i32_0 : i32, i32
  }
  func.func @transform_4(%arg0: i32, %arg1: i32) -> (i32, i32) {
    %c0_i32 = arith.constant 0 : i32
    %c0_i32_0 = arith.constant 0 : i32
    %c0_i32_1 = arith.constant 0 : i32
    return %c0_i32, %c0_i32_0 : i32, i32
  }
  func.func @transform_5(%arg0: i32, %arg1: i32) -> (i32, i32) {
    %c0_i32 = arith.constant 0 : i32
    %c0_i32_0 = arith.constant 0 : i32
    %c0_i32_1 = arith.constant 0 : i32
    return %c0_i32, %c0_i32_0 : i32, i32
  }
  func.func @transform_6(%arg0: i32, %arg1: i32) -> (i32, i32) {
    %c0_i32 = arith.constant 0 : i32
    %c0_i32_0 = arith.constant 0 : i32
    %c0_i32_1 = arith.constant 0 : i32
    return %c0_i32, %c0_i32_0 : i32, i32
  }
  func.func @transform_7(%arg0: i32, %arg1: i32) -> (i32, i32, i32) {
    %c0_i32 = arith.constant 0 : i32
    %c0_i32_0 = arith.constant 0 : i32
    return %arg0, %c0_i32, %arg1 : i32, i32, i32
  }
}

</mosaic_0001>

<bundles_post_ra>
// kernel: tpu_custom_call.1
= control target key start
LH: loop header
LB: loop body
LE: loop exit
PB: predicated region body
PF: predicated region fallthrough
CT: control target
= control target key end

     0   :  { %12 = vsyncpa [#allocation6], 0  ;;  %s1738_s0 = inlined_call_operand.vmem [shape: f32[2,4,160], index: 0, kind: input, shape index: {}]   ;;  %s1739_s1 = inlined_call_operand.vmem [shape: f32[24,4], index: 1, kind: input, shape index: {}]   ;;  %s1740_s2 = inlined_call_operand.vmem [shape: f32[24,1], index: 2, kind: input, shape index: {}]   ;;  %s1741_s3 = inlined_call_operand.vmem [shape: f32[8,40], index: 3, kind: input, shape index: {}]   ;;  %s1742_s4 = inlined_call_operand.vmem [shape: f32[8,1], index: 4, kind: input, shape index: {}]   ;;  %s1743_s5 = inlined_call_operand.vmem [shape: f32[8,184], index: 5, kind: input, shape index: {}]   ;;  %s1744_s6 = inlined_call_operand.vmem [shape: f32[8,1], index: 6, kind: input, shape index: {}]   ;;  %s1745_s7 = inlined_call_operand.hbm [shape: f32[2,24,128], index: 7, kind: output, shape index: {}]  }
   0x1   :  { %14 = vsyncpa [#allocation6 + $0x1], 0  ;;  %s1398_s24 = smov 0   ;;  %s1400_s25 = smov 0  }
   0x2   :  { %s1402_s26 = smov 0   ;;  %s1404_s27 = smov 0  }
   0x3   :  { %s1406_s28 = smov 0   ;;  %s1408_s29 = smov 0  }
   0x4 LB: > { %s1122_s30 = sadd.s32 4294967295, %s1325_s29   ;;  %s1123_s8 = sadd.s32 4294967294, %s1325_s29   ;;  %s1325_s29 = sphi %s1408_s29, %s20_s29   ;;  %s1321_s28 = sphi %s1406_s28, %s1778_s28   ;;  %s1317_s27 = sphi %s1404_s27, %s1777_s27   ;;  %s1313_s26 = sphi %s1402_s26, %s1776_s26   ;;  %s1309_s25 = sphi %s1400_s25, %s1775_s25   ;;  %s1305_s24 = sphi %s1398_s24, %s1774_s24  }
   0x5   : > { %s32_s9 = sadd.s32 1, %s1321_s28  ;;  %s193_s10 = sadd.s32 1, %s1313_s26 }
   0x6   : > { %p34_p0 = scmp.ge.s32.totalorder %s32_s9, 2  ;;  %p203_p1 = scmp.ne.s32.totalorder %s1313_s26, %s1309_s25 }
   0x7   : > { %p204_p2 = scmp.eq.s32.totalorder %s1122_s30, 1  ;;  %p209_p3 = scmp.ne.s32.totalorder %s1309_s25, %s1305_s24 }
   0x8   : > { %s1780_s9 = smov (%p34_p0, %s32_s9), 0  ;;  %p210_p5 = scmp.eq.s32.totalorder %s1123_s8, 1 }
   0x9   : > { %p1438_p4 = por %p204_p2, %p203_p1  ;;  %s188_s12 = ssub.s32 %s1321_s28, %s1780_s9 }
   0xa   : > { %p1126_p6 = scmp.ge.s32.totalorder %s1325_s29, 1  ;;  %p191_p7 = scmp.eq.s32.totalorder %s188_s12, 0 }
   0xb   : > { %p1445_p8 = por %p210_p5, %p209_p3  ;;  %p254_p9 = scmp.lt.s32.totalorder %s1325_s29, 3 }
   0xc   : > { %s1451_s14 = scalar_select %p191_p7, %s1313_s26, %s193_s10  }
   0xd   : > { %p255_p10 = pnand %p1126_p6, %p254_p9 }
   0xe   : > { %p286_p11 = scmp.lt.s32.totalorder (!%p255_p10), %s1317_s27, 1  ;;  %s1329_s10 = smov (!%p255_p10), 108  }
   0xf   : > { %258 = sbr.rel (%p255_p10) target bundleno = 715 (0x2cb), region = 48  ;;  %s1751_s16 = smov (!%p255_p10), 109  }
  0x10   : > { %s1754_s19 = smov (!%p255_p10), 112   ;;  %s1756_s20 = smov (!%p255_p10), 113  }
  0x11   : > { %s1335_s21 = smov (!%p255_p10), 114   ;;  %s1746_s22 = smov (!%p255_p10), 115  }
  0x12   : > { %s1748_s30 = smov (!%p255_p10), 117   ;;  %s1749_s8 = smov (!%p255_p10), 118  }
  0x13   : > { %s1750_s12 = smov (!%p255_p10), 119   ;;  %s1341_s15 = smov (!%p255_p10), 120  }
  0x14   : > { %v1327_v0 = vmov 0.0   ;;  %v301_v1 = vld [vmem:[%s1740_s2 + $0x8] sm:$0xff]  ;;  %vm451_vm0 = vcmask 261120   ;;  %s287_s17 = scalar_select %p286_p11, %s1317_s27, 1  ;;  %v1328_v2 = vmov 0   ;;  %v300_v3 = vld [vmem:[%s1740_s2] sm:$0xff]  ;;  %v430_v10 = vlaneseq }
  0x15   : > { %399 = vmatprep.mubr.f32.mxu1 %v1327_v0  ;;  %961 = vmatprep.subr.mxu0 %v1327_v0  ;;  %454 = vst.msk [vmem:[#allocation2 + $0x18] sm:$0xff] %vm451_vm0, %v1327_v0  ;;  %452 = vst.msk [vmem:[#allocation2 + $0x8] sm:$0xff] %vm451_vm0, %v1327_v0  ;;  %vm330_vm1 = vcmask 1043456   ;;  %v297_v6 = vld [vmem:[%s1739_s1] sm:$0xff]  ;;  %vm320_vm2 = vcmask 31744   ;;  %v298_v8 = vld [vmem:[%s1739_s1 + $0x8] sm:$0xff] }
  0x16   : > { %1246 = vset.pattern.permute.xlu0 %v1328_v2  ;;  %1247 = vset.pattern.permute.xlu1 %v1328_v2  ;;  %s1139_s18 = sshll.u32 %s287_s17, 3  ;;  %s1331_s17 = smov 110   ;;  %v299_v9 = vld [vmem:[%s1739_s1 + $0x10] sm:$0xff]  ;;  %v431_v11 = vand.u32 127, %v430_v10  ;;  %v927_v39 = vld [vmem:[%s1743_s5 + $0x8] sm:$0xff]  ;;  %vm957_vm6 = vcmask 457728  }
  0x17   : > { %310 = vperm.xlu0 %1246, %v301_v1   ;;  %s290_s23 = scalar_lea.vmem %s1738_s0, %s1139_s18  ;;  %s1332_s18 = smov 111   ;;  %1135 = vmatprep.mubr.msk.f32.mxu0 %vm957_vm6, %v927_v39  ;;  %v302_v42 = vld [vmem:[%s1740_s2 + $0x10] sm:$0xff]  ;;  %vm838_vm7 = vcmask 883712   ;;  %vm1352_vm8 = vmmov 0   ;;  %vm563_vm9 = vcmask 900096   ;;  %vm551_vm10 = vcmask 908288  }
  0x18   : > { %v296_v4 = vld [vmem:[%s290_s23] sm:$0xff]  ;;  %s1747_s23 = smov 116   ;;  %v434_v13 = vadd.s32 4294967280, %v431_v11  ;;  %vm826_vm11 = vcmask 891904   ;;  %vm471_vm12 = vcmask 916480   ;;  %vm505_vm13 = vcmask 924672  }
  0x19   : > { %v319_v5 = vcombine.high %v296_v4, %v296_v4  ;;  %vm517_vm14 = vcmask 932864   ;;  %vm759_vm15 = vcmask 941056   ;;  %vm579_vm0 = vcmask 326656  }
  0x1a   : > { %vm436_vm3 = vcmp.ge.s32.totalorder %v434_v13, 0  ;;  %vm438_vm4 = vcmp.lt.s32.totalorder %v434_v13, 16  ;;  %vm687_vm6 = vcmask 990208  }
  0x1b   : > { %305 = vperm.xlu0 %1246, %v300_v3   ;;  %1129 = vmatprep.subr.msk.mxu1 %vm330_vm1, %v319_v5  ;;  %vm440_vm5 = vmand %vm436_vm3, %vm438_vm4  ;;  %vm723_vm3 = vcmask 965632   ;;  %vm711_vm4 = vcmask 973824  }
  0x1c   : > { %v1471_v7 = vld [vmem:[#allocation2 + $0x18] sm:$0xff]  ;;  %1130 = vmatpush1.msk.msra.mxu1 %vm330_vm1, %v296_v4  ;;  %v556_v25 = vld [vmem:[#allocation2 + $0x8] sm:$0xff]  ;;  %vm747_vm1 = vcmask 949248  }
  0x1d   : > { %836 = vrot.lane.b32.xlu1 %v1471_v7, %s1329_s10  ;;  %1131 = vmatmul.mubr.msk.f32.vlgmr.msra.gmra.mxu1 %vm320_vm2, %v297_v6 }
  0x1e   : > { %1146 = vmatprep.subr.mxu1 %v1327_v0  ;;  %405 = vmatprep.mubr.f32.mxu1 %v1327_v0 }
  0x21   : > { %824 = vrot.lane.b32.xlu1 %v1471_v7, %s1751_s16  ;;  %1132 = vmatmul.mubr.msk.f32.gmra.mxu1 %vm320_vm2, %v298_v8  ;;  %s1752_s16 = smov 102  }
  0x22   : > { %411 = vmatprep.mubr.f32.mxu1 %v1327_v0 }
  0x25   : > { %813 = vrot.lane.b32.xlu1 %v1471_v7, %s1331_s17  ;;  %1133 = vmatmul.mubr.msk.f32.gmra.mxu1 %vm320_vm2, %v299_v9  ;;  %vm735_vm2 = vcmask 957440  }
  0x26   : > { %1156 = vmatprep.mubr.msk.f32.mxu1 %vm1352_vm8, %v1327_v0  ;;  %vm663_vm8 = vcmask 1006592  }
  0x29   : > { %802 = vrot.lane.b32.xlu1 %v1471_v7, %s1332_s18 }
  0x2d   : > { %791 = vrot.lane.b32.xlu1 %v1471_v7, %s1754_s19 }
  0x31   : > { %780 = vrot.lane.b32.xlu1 %v1471_v7, %s1756_s20 }
  0x35   : > { %769 = vrot.lane.b32.xlu1 %v1471_v7, %s1335_s21 }
  0x39   : > { %757 = vrot.lane.b32.xlu1 %v1471_v7, %s1746_s22  ;;  %s1342_s22 = smov 121  }
  0x3d   : > { %745 = vrot.lane.b32.xlu1 %v1471_v7, %s1747_s23  ;;  %s1343_s23 = smov 122  }
  0x41   : > { %733 = vrot.lane.b32.xlu1 %v1471_v7, %s1748_s30  ;;  %s1344_s30 = smov 123  }
  0x45   : > { %721 = vrot.lane.b32.xlu1 %v1471_v7, %s1749_s8  ;;  %s1345_s8 = smov 101  }
  0x49   : > { %709 = vrot.lane.b32.xlu1 %v1471_v7, %s1750_s12  ;;  %s1753_s12 = smov 103  }
  0x4d   : > { %697 = vrot.lane.b32.xlu1 %v1471_v7, %s1341_s15 }
  0x51   : > { %685 = vrot.lane.b32.xlu1 %v1471_v7, %s1342_s22 }
  0x55   : > { %673 = vrot.lane.b32.xlu1 %v1471_v7, %s1343_s23 }
  0x59   : > { %661 = vrot.lane.b32.xlu1 %v1471_v7, %s1344_s30 }
  0x5d   : > { %920 = vrot.lane.b32.xlu1 %v1471_v7, %s1345_s8 }
  0x8f   : > { %v837_v26 = vpop.permute.xlu1 %836 }
  0x92   : > { %v311_v12 = vpop.permute.xlu0 %310 }
  0x93   : > { %v1532_v27 = vpop.permute.xlu1 %824 }
  0x96   : > { %v306_v14 = vpop.permute.xlu0 %305 }
  0x97   : > { %v1539_v28 = vpop.permute.xlu1 %813 }
  0x9b   : > { %v1544_v29 = vpop.permute.xlu1 %802 }
  0x9f   : > { %v1551_v30 = vpop.permute.xlu1 %791 }
  0xa3   : > { %v1555_v31 = vpop.permute.xlu1 %780 }
  0xa7   : > { %v1560_v32 = vpop.permute.xlu1 %769 }
  0xab   : > { %v1563_v33 = vpop.permute.xlu1 %757 }
  0xaf   : > { %v1567_v34 = vpop.permute.xlu1 %745 }
  0xb3   : > { %v1570_v35 = vpop.permute.xlu1 %733 }
  0xb7   : > { %v1574_v36 = vpop.permute.xlu1 %721 }
  0xbb   : > { %v1577_v37 = vpop.permute.xlu1 %709 }
  0xbf   : > { %v1581_v38 = vpop.permute.xlu1 %697 }
  0xc3   : > { %v1587_v40 = vpop.permute.xlu1 %685 }
  0xc7   : > { %v1591_v41 = vpop.permute.xlu1 %673 }
  0xcb   : > { %v1596_v43 = vpop.permute.xlu1 %661 }
  0xcf   : > { %v1598_v44 = vpop.permute.xlu1 %920 }
  0xdd   : > { %v401_v15 = vpop.f32.mrf.mxu1 }
  0xde   : > { %v402_v16 = vadd.f32 %v401_v15, %v306_v14 }
  0xdf   : > { %v403_v17 = vpop.f32.mrf.mxu1 }
  0xe0   : > { %v418_v18 = vmax.f32 %v402_v16, 0.0  ;;  %v567_v16 = vld [vmem:[%s1741_s3] sm:$0xff] }
  0xe1   : > { %v407_v19 = vpop.f32.mrf.mxu1 }
  0xe2   : > { %v446_v20 = vsel %vm440_vm5, %v418_v18, 0.0  ;;  %v408_v21 = vadd.f32 %v407_v19, %v311_v12 }
  0xe3   : > { %559 = vrot.lane.b32.xlu0 %v446_v20, %s1331_s17  ;;  %v409_v22 = vpop.f32.mrf.mxu1 }
  0xe4   : > { %v420_v23 = vmax.f32 %v408_v21, 0.0 }
  0xe6   : > { %v448_v24 = vsel %vm440_vm5, %v420_v23, 0.0  ;;  %vm699_vm5 = vcmask 982016  }
  0xe7   : > { %834 = vrot.lane.b32.xlu1 %v448_v24, %s1329_s10  ;;  %547 = vrot.lane.b32.xlu0 %v446_v20, %s1332_s18  ;;  %s1762_s10 = smov 109  }
  0xeb   : > { %908 = vrot.lane.b32.xlu1 %v1471_v7, %s1752_s16  ;;  %536 = vrot.lane.b32.xlu0 %v446_v20, %s1754_s19  ;;  %s1348_s16 = smov 104  }
  0xef   : > { %561 = vrot.lane.b32.xlu1 %v556_v25, %s1331_s17  ;;  %525 = vrot.lane.b32.xlu0 %v446_v20, %s1756_s20 }
  0xf3   : > { %896 = vrot.lane.b32.xlu1 %v1471_v7, %s1753_s12  ;;  %513 = vrot.lane.b32.xlu0 %v446_v20, %s1335_s21  ;;  %s1759_s12 = smov 105  }
  0xf7   : > { %549 = vrot.lane.b32.xlu1 %v556_v25, %s1332_s18  ;;  %822 = vrot.lane.b32.xlu0 %v448_v24, %s1762_s10  ;;  %s1758_s10 = smov 106  }
  0xfb   : > { %884 = vrot.lane.b32.xlu1 %v1471_v7, %s1348_s16  ;;  %811 = vrot.lane.b32.xlu0 %v448_v24, %s1331_s17  ;;  %s1763_s17 = smov 115  }
  0xff   : > { %538 = vrot.lane.b32.xlu1 %v556_v25, %s1754_s19  ;;  %800 = vrot.lane.b32.xlu0 %v448_v24, %s1332_s18  ;;  %s1764_s18 = smov 116  }
 0x103   : > { %872 = vrot.lane.b32.xlu1 %v1471_v7, %s1759_s12  ;;  %789 = vrot.lane.b32.xlu0 %v448_v24, %s1754_s19  ;;  %s1351_s19 = smov 107   ;;  %s1767_s12 = smov 119  }
 0x107   : > { %527 = vrot.lane.b32.xlu1 %v556_v25, %s1756_s20  ;;  %778 = vrot.lane.b32.xlu0 %v448_v24, %s1756_s20  ;;  %s1765_s20 = smov 117  }
 0x10b   : > { %860 = vrot.lane.b32.xlu1 %v1471_v7, %s1758_s10  ;;  %767 = vrot.lane.b32.xlu0 %v448_v24, %s1335_s21  ;;  %s1766_s10 = smov 118  }
 0x10f   : > { %515 = vrot.lane.b32.xlu1 %v556_v25, %s1335_s21  ;;  %755 = vrot.lane.b32.xlu0 %v448_v24, %s1763_s17  ;;  %s1769_s21 = smov 103  }
 0x113   : > { %743 = vrot.lane.b32.xlu0 %v448_v24, %s1764_s18  ;;  %848 = vrot.lane.b32.xlu1 %v1471_v7, %s1351_s19  ;;  %s1353_s18 = smov 127  }
 0x117   : > { %731 = vrot.lane.b32.xlu0 %v448_v24, %s1765_s20  ;;  %s1768_s20 = smov 102  }
 0x11b   : > { %719 = vrot.lane.b32.xlu0 %v448_v24, %s1766_s10  ;;  %s1160_s10 = smul.u32 384, %s1317_s27  ;;  %s1355_s27 = smov [#allocation5]  }
 0x11f   : > { %707 = vrot.lane.b32.xlu0 %v448_v24, %s1767_s12  ;;  %s283_s12 = sand.u32 1, %s1309_s25  }
 0x123   : > { %695 = vrot.lane.b32.xlu0 %v448_v24, %s1341_s15  ;;  %s1693_s15 = scalar_lea.sflag [#allocation6], %s283_s12 }
 0x127   : > { %683 = vrot.lane.b32.xlu0 %v448_v24, %s1342_s22 }
 0x12b   : > { %671 = vrot.lane.b32.xlu0 %v448_v24, %s1343_s23  ;;  %s1770_s23 = smov 105  }
 0x12f   : > { %659 = vrot.lane.b32.xlu0 %v448_v24, %s1344_s30  ;;  %s1771_s30 = smov 106  }
 0x133   : > { %918 = vrot.lane.b32.xlu0 %v448_v24, %s1345_s8  ;;  %s1773_s8 = smov 113  }
 0x137   : > { %906 = vrot.lane.b32.xlu0 %v448_v24, %s1768_s20  ;;  %s1354_s20 = smov 126  }
 0x13b   : > { %894 = vrot.lane.b32.xlu0 %v448_v24, %s1769_s21  ;;  %s1690_s21 = scalar_lea.hbm %s1745_s7, %s1160_s10 }
 0x13f   : > { %882 = vrot.lane.b32.xlu0 %v448_v24, %s1348_s16 }
 0x143   : > { %870 = vrot.lane.b32.xlu0 %v448_v24, %s1770_s23  ;;  %s1253_s23 = sshll.u32 %s1355_s27, 4  ;;  %s1254_s23 = int_to_ptr.vmem [resolvable:$false] %s1253_s23 }
 0x147   : > { %858 = vrot.lane.b32.xlu0 %v448_v24, %s1771_s30  ;;  %s1772_s30 = smov 112  }
 0x14b   : > { %846 = vrot.lane.b32.xlu0 %v448_v24, %s1351_s19  ;;  %s1159_s19 = smul.u32 24, %s283_s12 }
 0x14d   : > { %s285_s16 = scalar_lea.vmem [#allocation5], %s1159_s19 }
 0x14e   : > { %s1048_s17 = sshll.u32 %s285_s16, 4  ;;  %s1685_s17 = int_to_ptr.vmem [resolvable:$true] %s1048_s17 }
 0x14f   : > { %315 = vperm.xlu0 %1246, %v302_v42   ;;  %s1249_s22 = scalar_lea.vmem %s1685_s17, 384  ;;  %p1256_p1 = scmp.lt.s32.totalorder %s1685_s17, %s1254_s23 }
 0x150   : > { %p1250_p12 = scmp.ne.s32.totalorder %s1685_s17, %s1249_s22 }
 0x152   : > { %p1251_p13 = pnand %p1250_p12, %p1438_p4 }
 0x154   : > { %p1252_p0 = pneg %p1251_p13 }
 0x155   : > { %v560_v45 = vpop.permute.xlu0 %559 }
 0x159   : > { %v835_v46 = vpop.permute.xlu1 %834  ;;  %v548_v47 = vpop.permute.xlu0 %547 }
 0x15a   : > { %v839_v48 = vsel %vm838_vm7, %v835_v46, %v837_v26  ;;  %vm675_vm7 = vcmask 998400  }
 0x15b   : > { %962 = vmatpush1.msra.mxu0 %v839_v48 }
 0x15c   : > { %963 = vmatprep.subr.mxu0 %v1327_v0 }
 0x15d   : > { %v1602_v49 = vpop.permute.xlu1 %908  ;;  %v537_v50 = vpop.permute.xlu0 %536 }
 0x161   : > { %v562_v51 = vpop.permute.xlu1 %561  ;;  %v526_v52 = vpop.permute.xlu0 %525 }
 0x162   : > { %v564_v53 = vsel %vm563_vm9, %v560_v45, %v562_v51  ;;  %v413_v51 = vpop.f32.mrf.mxu1 }
 0x163   : > { %1147 = vmatpush3.msra.mxu1 %v564_v53 }
 0x164   : > { %1148 = vmatprep.subr.mxu1 %v1327_v0 }
 0x165   : > { %v1606_v54 = vpop.permute.xlu1 %896  ;;  %v514_v55 = vpop.permute.xlu0 %513 }
 0x169   : > { %v550_v56 = vpop.permute.xlu1 %549  ;;  %v823_v57 = vpop.permute.xlu0 %822 }
 0x16a   : > { %v552_v58 = vsel %vm551_vm10, %v548_v47, %v550_v56  ;;  %v827_v59 = vsel %vm826_vm11, %v823_v57, %v1532_v27  ;;  %vm898_vm11 = vcmask 842752   ;;  %v573_v56 = vld [vmem:[%s1742_s4] sm:$0xff] }
 0x16b   : > { %1149 = vmatpush3.msra.mxu1 %v552_v58  ;;  %964 = vmatpush1.msra.mxu0 %v827_v59 }
 0x16c   : > { %965 = vmatprep.subr.mxu0 %v1327_v0  ;;  %1150 = vmatprep.subr.mxu1 %v1327_v0 }
 0x16d   : > { %v1612_v60 = vpop.permute.xlu1 %884  ;;  %v812_v61 = vpop.permute.xlu0 %811 }
 0x16e   : > { %v815_v62 = vsel %vm563_vm9, %v812_v61, %v1539_v28  ;;  %vm922_vm9 = vcmask 826368  }
 0x16f   : > { %966 = vmatpush1.msra.mxu0 %v815_v62 }
 0x170   : > { %967 = vmatprep.subr.mxu0 %v1327_v0 }
 0x171   : > { %v539_v63 = vpop.permute.xlu1 %538  ;;  %v801_v1 = vpop.permute.xlu0 %800 }
 0x172   : > { %v540_v2 = vsel %vm471_vm12, %v537_v50, %v539_v63  ;;  %v804_v3 = vsel %vm551_vm10, %v801_v1, %v1544_v29  ;;  %vm910_vm10 = vcmask 834560  }
 0x173   : > { %1151 = vmatpush3.msra.mxu1 %v540_v2  ;;  %968 = vmatpush1.msra.mxu0 %v804_v3 }
 0x174   : > { %969 = vmatprep.subr.mxu0 %v1327_v0  ;;  %1152 = vmatprep.subr.mxu1 %v1327_v0 }
 0x175   : > { %v1622_v4 = vpop.permute.xlu1 %872  ;;  %v790_v5 = vpop.permute.xlu0 %789 }
 0x176   : > { %v793_v6 = vsel %vm471_vm12, %v790_v5, %v1551_v30 }
 0x177   : > { %970 = vmatpush1.msra.mxu0 %v793_v6 }
 0x178   : > { %971 = vmatprep.subr.mxu0 %v1327_v0 }
 0x179   : > { %v528_v7 = vpop.permute.xlu1 %527  ;;  %v779_v8 = vpop.permute.xlu0 %778 }
 0x17a   : > { %v529_v9 = vsel %vm505_vm13, %v526_v52, %v528_v7  ;;  %v782_v10 = vsel %vm505_vm13, %v779_v8, %v1555_v31  ;;  %v415_v52 = vpop.f32.mrf.mxu1 }
 0x17b   : > { %1153 = vmatpush3.msra.mxu1 %v529_v9  ;;  %972 = vmatpush1.msra.mxu0 %v782_v10 }
 0x17c   : > { %973 = vmatprep.subr.mxu0 %v1327_v0  ;;  %1154 = vmatprep.subr.mxu1 %v1327_v0 }
 0x17d   : > { %v1632_v11 = vpop.permute.xlu1 %860  ;;  %v768_v12 = vpop.permute.xlu0 %767 }
 0x17e   : > { %v771_v13 = vsel %vm517_vm14, %v768_v12, %v1560_v32 }
 0x17f   : > { %974 = vmatpush1.msra.mxu0 %v771_v13 }
 0x180   : > { %975 = vmatprep.subr.mxu0 %v1327_v0 }
 0x181   : > { %v516_v14 = vpop.permute.xlu1 %515  ;;  %v756_v15 = vpop.permute.xlu0 %755 }
 0x182   : > { %v518_v17 = vsel %vm517_vm14, %v514_v55, %v516_v14  ;;  %v760_v18 = vsel %vm759_vm15, %v756_v15, %v1563_v33  ;;  %vm886_vm14 = vcmask 850944   ;;  %vm874_vm15 = vcmask 859136  }
 0x183   : > { %1155 = vmatpush3.msra.mxu1 %v518_v17  ;;  %976 = vmatpush1.msra.mxu0 %v760_v18 }
 0x184   : > { %977 = vmatprep.subr.mxu0 %v1327_v0  ;;  %1157 = vmatmul.mubr.msk.f32.vlgmr.msra.gmra.mxu1 %vm579_vm0, %v567_v16  ;;  %vm862_vm0 = vcmask 867328  }
 0x185   : > { %v744_v19 = vpop.permute.xlu0 %743  ;;  %v849_v47 = vpop.permute.xlu1 %848 }
 0x186   : > { %v748_v20 = vsel %vm747_vm1, %v744_v19, %v1567_v34  ;;  %vm850_vm1 = vcmask 875520  }
 0x187   : > { %978 = vmatpush1.msra.mxu0 %v748_v20 }
 0x188   : > { %979 = vmatprep.subr.mxu0 %v1327_v0 }
 0x189   : > { %v732_v21 = vpop.permute.xlu0 %731 }
 0x18a   : > { %v736_v22 = vsel %vm735_vm2, %v732_v21, %v1570_v35  ;;  %vm481_vm2 = vcmask 1039360  }
 0x18b   : > { %980 = vmatpush1.msra.mxu0 %v736_v22 }
 0x18c   : > { %981 = vmatprep.subr.mxu0 %v1327_v0 }
 0x18d   : > { %v720_v23 = vpop.permute.xlu0 %719 }
 0x18e   : > { %v724_v24 = vsel %vm723_vm3, %v720_v23, %v1574_v36  ;;  %vm491_vm3 = vcmask 1031168  }
 0x18f   : > { %982 = vmatpush1.msra.mxu0 %v724_v24 }
 0x190   : > { %983 = vmatprep.subr.mxu0 %v1327_v0 }
 0x191   : > { %v708_v25 = vpop.permute.xlu0 %707 }
 0x192   : > { %v712_v26 = vsel %vm711_vm4, %v708_v25, %v1577_v37 }
 0x193   : > { %984 = vmatpush1.msra.mxu0 %v712_v26 }
 0x194   : > { %985 = vmatprep.subr.mxu0 %v1327_v0 }
 0x195   : > { %v696_v27 = vpop.permute.xlu0 %695 }
 0x196   : > { %v700_v28 = vsel %vm699_vm5, %v696_v27, %v1581_v38 }
 0x197   : > { %986 = vmatpush1.msra.mxu0 %v700_v28 }
 0x198   : > { %987 = vmatprep.subr.mxu0 %v1327_v0 }
 0x199   : > { %v684_v29 = vpop.permute.xlu0 %683 }
 0x19a   : > { %v688_v30 = vsel %vm687_vm6, %v684_v29, %v1587_v40 }
 0x19b   : > { %988 = vmatpush1.msra.mxu0 %v688_v30 }
 0x19c   : > { %989 = vmatprep.subr.mxu0 %v1327_v0 }
 0x19d   : > { %v672_v31 = vpop.permute.xlu0 %671 }
 0x19e   : > { %v676_v32 = vsel %vm675_vm7, %v672_v31, %v1591_v41 }
 0x19f   : > { %990 = vmatpush1.msra.mxu0 %v676_v32 }
 0x1a0   : > { %991 = vmatprep.subr.mxu0 %v1327_v0 }
 0x1a1   : > { %v660_v33 = vpop.permute.xlu0 %659 }
 0x1a2   : > { %v664_v34 = vsel %vm663_vm8, %v660_v33, %v1596_v43 }
 0x1a3   : > { %992 = vmatpush1.msra.mxu0 %v664_v34 }
 0x1a4   : > { %1011 = vmatprep.subr.mxu0 %v1327_v0 }
 0x1a5   : > { %v919_v35 = vpop.permute.xlu0 %918 }
 0x1a6   : > { %v923_v36 = vsel %vm922_vm9, %v919_v35, %v1598_v44 }
 0x1a7   : > { %1012 = vmatpush2.msra.mxu0 %v923_v36 }
 0x1a8   : > { %1013 = vmatprep.subr.mxu0 %v1327_v0 }
 0x1a9   : > { %v907_v37 = vpop.permute.xlu0 %906 }
 0x1aa   : > { %v911_v38 = vsel %vm910_vm10, %v907_v37, %v1602_v49  ;;  %v926_v49 = vld [vmem:[%s1743_s5] sm:$0xff] }
 0x1ab   : > { %1014 = vmatpush2.msra.mxu0 %v911_v38 }
 0x1ac   : > { %1015 = vmatprep.subr.mxu0 %v1327_v0 }
 0x1ad   : > { %v895_v39 = vpop.permute.xlu0 %894 }
 0x1ae   : > { %v899_v40 = vsel %vm898_vm11, %v895_v39, %v1606_v54 }
 0x1af   : > { %1016 = vmatpush2.msra.mxu0 %v899_v40 }
 0x1b0   : > { %1017 = vmatprep.subr.mxu0 %v1327_v0 }
 0x1b1   : > { %v883_v41 = vpop.permute.xlu0 %882 }
 0x1b2   : > { %v887_v42 = vsel %vm886_vm14, %v883_v41, %v1612_v60 }
 0x1b3   : > { %1018 = vmatpush2.msra.mxu0 %v887_v42 }
 0x1b4   : > { %1019 = vmatprep.subr.mxu0 %v1327_v0 }
 0x1b5   : > { %v871_v43 = vpop.permute.xlu0 %870 }
 0x1b6   : > { %v875_v44 = vsel %vm874_vm15, %v871_v43, %v1622_v4 }
 0x1b7   : > { %1020 = vmatpush2.msra.mxu0 %v875_v44 }
 0x1b8   : > { %1021 = vmatprep.subr.mxu0 %v1327_v0 }
 0x1b9   : > { %v859_v45 = vpop.permute.xlu0 %858 }
 0x1ba   : > { %v863_v46 = vsel %vm862_vm0, %v859_v45, %v1632_v11 }
 0x1bb   : > { %1022 = vmatpush2.msra.mxu0 %v863_v46 }
 0x1bc   : > { %1023 = vmatprep.subr.mxu0 %v1327_v0  ;;  %v951_v0 = vld [vmem:[%s1744_s6] sm:$0xff] }
 0x1bd   : > { %v847_v48 = vpop.permute.xlu0 %846 }
 0x1be   : > { %v851_v50 = vsel %vm850_vm1, %v847_v48, %v849_v47 }
 0x1bf   : > { %1024 = vmatpush2.msra.mxu0 %v851_v50 }
 0x1c0   : > { %1026 = vmatmul.mubr.f32.vlgmr.msra.gmra.mxu0 %v926_v49 }
 0x1ca   : > { %v316_v53 = vpop.permute.xlu0 %315 }
 0x1cb   : > { %v414_v54 = vadd.f32 %v413_v51, %v316_v53  ;;  %v416_v55 = vadd.f32 %v415_v52, %v316_v53 }
 0x1cd   : > { %479 = vrot.lane.b32.xlu0 %v416_v55, %s1353_s18  ;;  %477 = vrot.lane.b32.xlu1 %v414_v54, %s1353_s18  ;;  %v464_v57 = vmax.f32 %v416_v55, 0.0  ;;  %v463_v58 = vmax.f32 %v414_v54, 0.0 }
 0x1d1   : > { %489 = vrot.lane.b32.xlu0 %v416_v55, %s1354_s20  ;;  %487 = vrot.lane.b32.xlu1 %v414_v54, %s1354_s20 }
 0x1d5   : > { %954 = vperm.xlu0 %1246, %v951_v0   ;;  %576 = vperm.xlu1 %1247, %v573_v56  }
 0x1d9   : > { %469 = vrot.lane.b32.xlu0 %v464_v57, %s1772_s30  ;;  %467 = vrot.lane.b32.xlu1 %v463_v58, %s1772_s30  ;;  %s1255_s30 = scalar_lea.vmem %s1254_s23, 768 }
 0x1da   : > { %p1257_p2 = scmp.lt.s32.totalorder %s1255_s30, %s1249_s22 }
 0x1dc   : > { %p1258_p3 = por %p1257_p2, %p1256_p1 }
 0x1de   : > { %p1259_p5 = pnand %p1258_p3, %p1252_p0 }
 0x23f   : > { %v480_v59 = vpop.permute.xlu0 %479  ;;  %v478_v60 = vpop.permute.xlu1 %477 }
 0x240   : > { %v482_v61 = vsel %vm481_vm2, %v478_v60, %v480_v59  ;;  %v486_v62 = vadd.f32 %v480_v59, %v416_v55 }
 0x241   : > { %v485_v63 = vadd.f32 %v482_v61, %v414_v54 }
 0x243   : > { %v490_v1 = vpop.permute.xlu0 %489  ;;  %v488_v2 = vpop.permute.xlu1 %487 }
 0x244   : > { %v496_v3 = vadd.f32 %v490_v1, %v486_v62  ;;  %v492_v4 = vsel %vm491_vm3, %v488_v2, %v490_v1  ;;  %v649_v5 = vpop.f32.mrf.mxu1 }
 0x245   : > { %v495_v6 = vadd.f32 %v492_v4, %v485_v63 }
 0x246   : > { %v498_v7 = vmax.f32 %v496_v3, 0.0  ;;  %v1158_v8 = vpop.f32.mrf.mxu1 }
 0x247   : > { %v497_v9 = vmax.f32 %v495_v6, 0.0 }
 0x248   : > { %503 = vrot.lane.b32.xlu0 %v498_v7, %s1773_s8 }
 0x249   : > { %501 = vrot.lane.b32.xlu1 %v497_v9, %s1773_s8 }
 0x250   : > { %v955_v10 = vpop.permute.xlu0 %954  ;;  %v577_v11 = vpop.permute.xlu1 %576 }
 0x251   : > { %v650_v12 = vadd.f32 %v649_v5, %v577_v11 }
 0x253   : > { %v653_v13 = vmax.f32 %v650_v12, 0.0 }
 0x254   : > { %v470_v14 = vpop.permute.xlu0 %469  ;;  %v468_v15 = vpop.permute.xlu1 %467 }
 0x255   : > { %v472_v16 = vsel %vm471_vm12, %v468_v15, %v470_v14  ;;  %654 = vst [vmem:[%s285_s16 + $0x4] sm:$0xff] %v653_v13 }
 0x256   : > { %474 = vst [vmem:[%s285_s16] sm:$0xf] %v472_v16 }
 0x280   : > { %v1027_v17 = vpop.f32.mrf.mxu0 }
 0x281   : > { %v1028_v18 = vadd.f32 %v1027_v17, %v955_v10 }
 0x282   : > { %v1029_v19 = vpop.f32.mrf.mxu0 }
 0x283   : > { %v1031_v20 = vmax.f32 %v1028_v18, 0.0 }
 0x285   : > { %1032 = vst [vmem:[%s285_s16 + $0xc] sm:$0xff] %v1031_v20 }
 0x2ba   : > { %v504_v21 = vpop.permute.xlu0 %503 }
 0x2bb   : > { %v502_v22 = vpop.permute.xlu1 %501 }
 0x2bc   : > { %v506_v23 = vsel %vm505_vm13, %v502_v22, %v504_v21 }
 0x2bd   : > { %508 = vst [vmem:[%s285_s16 + $0x10] sm:$0xf0] %v506_v23 }
 0x2be   : > { %1262 = shalt.err (!%p1259_p5)
}
 0x2bf   : > { %s1263_s8 = scalar_lea.hbm %s1690_s21, 384  ;;  %s1267_s16 = scalar_lea.hbm %s1745_s7, 768 }
 0x2c0   : > { %p1264_p6 = scmp.ne.s32.totalorder %s1690_s21, %s1263_s8  ;;  %p1268_p10 = scmp.lt.s32.totalorder %s1690_s21, %s1745_s7 }
 0x2c1   : > { %p1269_p11 = scmp.lt.s32.totalorder %s1267_s16, %s1263_s8 }
 0x2c2   : > { %p1265_p7 = pnand %p1264_p6, %p1438_p4 }
 0x2c3   : > { %p1270_p12 = por %p1269_p11, %p1268_p10 }
 0x2c4   : > { %p1266_p9 = pneg %p1265_p7 }
 0x2c6   : > { %p1271_p13 = pnand %p1270_p12, %p1266_p9 }
 0x2c8   : > { %1274 = shalt.err (!%p1271_p13)
}
 0x2c9   : > { %s1356_s20 = smov 128   ;;  %s1357_s22 = smov 8  }
 0x2ca   : > { %1161 = dma.vmem_to_hbm [thread:$0]  (%p1438_p4), %s1685_s17, 384, %s1690_s21, %s1693_s15, %s1356_s20, %s1356_s20, %s1357_s22  }
 0x2cb PF: > { %p1167_p0 = scmp.ge.s32.totalorder %s1325_s29, 2  ;;  %s1063_s27 = sand.u32 1, %s1305_s24  }
 0x2cc   : > { %s1064_s23 = scalar_lea.sflag [#allocation6], %s1063_s27 }
 0x2cd   : > { %p1164_p1 = pnand %p1167_p0, %p1445_p8 }
 0x2cf   : > { %p1165_p2 = pneg %p1164_p1 }
 0x2d1   : > { %1300 = dma.done.wait (%p1165_p2), %s1064_s23, 384  }
 0x2d2   : > { %1302 = vsyncadd (%p1165_p2), %s1064_s23, 4294966912  ;;  %s20_s29 = sadd.s32 1, %s1325_s29   ;;  %s1774_s24 = smov %s1309_s25 }
 0x2d3   : > { %p17_p3 = scmp.ge.s32.totalorder %s20_s29, 4   ;;  %s1775_s25 = smov %s1313_s26 }
 0x2d4   : > { %s1776_s26 = smov %s1451_s14  ;;  %s1777_s27 = smov %s1321_s28 }
 0x2d5   : > { %s1778_s28 = smov %s1780_s9  ;;  %19 = sbr.rel (!%p17_p3) target bundleno = 4 (0x4), region = 92 }
 0x2da   :  { %1069 = vsyncpa [#allocation6], 1 }
 0x2db   :  { %1071 = vsyncpa [#allocation6 + $0x1], 1 }

</bundles_post_ra>
